<compile_context>
chip_gen: v7x
topology: tpu7x:2x2x1
jax: 0.10.0
libtpu: 0.0.40
codegen_flags: <defaults>
</compile_context>

<pallas_src>
import functools

import jax
import jax.numpy as jnp
from jax.experimental import pallas as pl
from jax.experimental.pallas import tpu as pltpu


def _patch_embed_kernel(p_ref, w_ref, b_ref, o_ref):
    # p_ref: (tm, K) flattened patches, w_ref: (K, E_pad), b_ref: (1, E_pad) f32
    acc = jnp.dot(p_ref[...], w_ref[...], preferred_element_type=jnp.float32)
    o_ref[...] = (acc + b_ref[...]).astype(o_ref.dtype)


def _round_up(x, m):
    return ((x + m - 1) // m) * m


def _query_physical_vmem_bytes():
    """Best-effort physical VMEM query; conservative (v7x-sized) fallback."""
    try:
        info = pltpu.get_tpu_info()
        for attr in ("vmem_capacity_bytes", "vmem_bytes", "vmem_size_bytes"):
            v = getattr(info, attr, None)
            if v:
                return int(v)
    except Exception:
        pass
    return 64 << 20


def _vmem_budget_and_limit():
    phys = _query_physical_vmem_bytes()
    if phys <= (64 << 20):            # v7x: 64 MiB physical / 32 MiB scoped default
        return 40 << 20, 48 << 20
    return 80 << 20, 96 << 20         # v5e / v6e: 128 MiB physical


def _vmem_footprint(tm, K, E_pad, in_itemsize, out_itemsize):
    """VMEM bytes with lane(128)/sublane(8 or 16) tile padding.

    Patches + output tiles are double-buffered by the pipeline; the weight and
    bias blocks are grid-invariant (same index every step) so one copy each.
    """
    sub_in = 8 * (4 // in_itemsize)     # 8 for f32, 16 for bf16
    sub_out = 8 * (4 // out_itemsize)
    k_lane = _round_up(K, 128)
    k_sub = _round_up(K, sub_in)
    patches = 2 * _round_up(tm, sub_in) * k_lane * in_itemsize
    weight = k_sub * E_pad * in_itemsize
    bias = 8 * E_pad * 4
    outbuf = 2 * _round_up(tm, sub_out) * E_pad * out_itemsize
    return patches + weight + bias + outbuf


def _pick_tm(M, K, E_pad, in_itemsize, out_itemsize, budget):
    """Largest M-tile fitting the budget, keeping >= 2 grid steps when possible."""
    sub = max(8 * (4 // in_itemsize), 8 * (4 // out_itemsize))
    cap = max(sub, _round_up(pl.cdiv(M, 2), sub))   # grid_m >= 2 for v7x megacore
    candidates = [c for c in (8192, 4096, 2048, 1024, 512, 256, 128, 64, 32, 16, 8)
                  if c % sub == 0]
    for tm in candidates:
        tm_eff = min(tm, cap)
        if _vmem_footprint(tm_eff, K, E_pad, in_itemsize, out_itemsize) <= budget:
            return tm_eff
    return sub


def patch_embed_forward(x, conv_w, conv_b, patch_size, inner_patches,
                        compute_dtype=None, out_dtype=None):
    """Reproduces PatchEmbed.forward (norm_layer=None).

    x:       (B, C, H, W)    NCHW
    conv_w:  (E, C, cs, cs)  Conv2d weight (PyTorch OIHW layout)
    conv_b:  (E,)            Conv2d bias
    compute_dtype: optional dtype (e.g. jnp.bfloat16) for matmul operands;
                   accumulation + bias add are always f32.
    out_dtype: output dtype (default x.dtype); bf16 halves the dominant
               M*E HBM write on this memory-bound kernel.
    returns: (B, num_patches, inner_patches, inner_patches, E)
    """
    B, C, H, W = x.shape
    E = conv_w.shape[0]
    cs = patch_size // inner_patches
    assert conv_w.shape == (E, C, cs, cs)

    pr0, pr1 = H // patch_size, W // patch_size
    num_patches = pr0 * pr1
    K = C * cs * cs
    M = B * pr0 * pr1 * inner_patches * inner_patches

    out_dtype = jnp.dtype(x.dtype if out_dtype is None else out_dtype)

    # --- glue: extract non-overlapping cs x cs blocks directly in the FINAL
    # row order (b, pr0, pr1, inner_h, inner_w); columns ordered (c, kh, kw)
    # to match PyTorch's conv weight flattening -> no output transpose needed.
    # TODO(synk): verify via HLO dump that allow_input_fusion actually fuses
    # this 8-D transpose into the pallas_call operand; if XLA materializes it,
    # move the gather into the kernel (memory_space=pl.ANY + manual DMA).
    patches = x.reshape(B, C, pr0, inner_patches, cs, pr1, inner_patches, cs)
    patches = patches.transpose(0, 2, 5, 3, 6, 1, 4, 7)  # (B,pr0,pr1,ih,iw,C,kh,kw)
    patches = patches.reshape(M, K)

    w_mat = conv_w.reshape(E, K).T                      # (K, E)
    b_mat = conv_b.reshape(1, E).astype(jnp.float32)    # bias added in f32

    if compute_dtype is not None:
        patches = patches.astype(compute_dtype)
        w_mat = w_mat.astype(compute_dtype)

    in_itemsize = patches.dtype.itemsize
    out_itemsize = out_dtype.itemsize

    # Pad E to a multiple of 128: lane-dense (unmasked) output stores.
    E_pad = _round_up(E, 128)
    if E_pad != E:
        w_mat = jnp.pad(w_mat, ((0, 0), (0, E_pad - E)))
        b_mat = jnp.pad(b_mat, ((0, 0), (0, E_pad - E)))

    budget, vmem_limit = _vmem_budget_and_limit()
    tm = _pick_tm(M, K, E_pad, in_itemsize, out_itemsize, budget)
    grid_m = pl.cdiv(M, tm)
    M_pad = grid_m * tm
    if M_pad != M:
        # Explicit zero-padding: no ragged last tile, no uninitialized rows.
        patches = jnp.pad(patches, ((0, M_pad - M), (0, 0)))

    in_bytes = M_pad * K * in_itemsize + K * E_pad * in_itemsize + E_pad * 4
    out_bytes = M_pad * E_pad * out_itemsize
    cost = pl.CostEstimate(flops=2 * M_pad * K * E_pad, transcendentals=0,
                           bytes_accessed=in_bytes + out_bytes)

    out_flat = pl.pallas_call(
        _patch_embed_kernel,
        out_shape=jax.ShapeDtypeStruct((M_pad, E_pad), out_dtype),
        grid_spec=pltpu.PrefetchScalarGridSpec(
            num_scalar_prefetch=0,
            grid=(grid_m,),
            in_specs=[
                pl.BlockSpec((tm, K), lambda i: (i, 0)),
                pl.BlockSpec((K, E_pad), lambda i: (0, 0)),
                pl.BlockSpec((1, E_pad), lambda i: (0, 0)),
            ],
            out_specs=pl.BlockSpec((tm, E_pad), lambda i: (i, 0)),
        ),
        compiler_params=pltpu.CompilerParams(
            # parallel M axis: sharded across both TCs on v7x, no-op otherwise
            dimension_semantics=("parallel",),
            vmem_limit_bytes=vmem_limit,
            # let XLA fuse the patchify transpose / weight pad into operands
            allow_input_fusion=[True, True, True],
        ),
        cost_estimate=cost,
    )(patches, w_mat, b_mat)

    # rows already in (b, pr0, pr1, ih, iw) order -> slice padding, reshape free
    out = out_flat[:M, :E]
    return out.reshape(B, num_patches, inner_patches, inner_patches, E)


def _reference_forward(x, conv_w, conv_b, patch_size, inner_patches):
    """Pure-JAX reference using lax.conv (matches PyTorch semantics)."""
    cs = patch_size // inner_patches
    B, C, H, W = x.shape
    E = conv_w.shape[0]
    pr0, pr1 = H // patch_size, W // patch_size
    conv = jax.lax.conv_general_dilated(
        x, conv_w, window_strides=(cs, cs), padding="VALID",
        dimension_numbers=("NCHW", "OIHW", "NCHW"))
    conv = conv + conv_b.reshape(1, E, 1, 1)
    out = conv.reshape(B, E, pr0, inner_patches, pr1, inner_patches)
    out = out.transpose(0, 2, 4, 3, 5, 1)
    return out.reshape(B, pr0 * pr1, inner_patches, inner_patches, E)


if __name__ == "__main__":
    # Small shapes consistent with the module:
    #   img_size=16, patch_size=8, inner_patches=4 -> conv_size=2
    #   in_chans=4, embed_dim=32, batch=2
    B, C, H, W = 2, 4, 16, 16
    patch_size = 8
    inner_patches = 4
    embed_dim = 32
    cs = patch_size // inner_patches

    key = jax.random.PRNGKey(0)
    kx, kw, kb = jax.random.split(key, 3)
    x = jax.random.normal(kx, (B, C, H, W), dtype=jnp.float32)
    conv_w = (jax.random.normal(kw, (embed_dim, C, cs, cs), dtype=jnp.float32)
              * 0.02)
    conv_b = jax.random.normal(kb, (embed_dim,), dtype=jnp.float32) * 0.02

    expected_shape = (B, (H // patch_size) * (W // patch_size),
                      inner_patches, inner_patches, embed_dim)

    # --- f32 path: match against the conv reference ---
    fwd_f32 = jax.jit(functools.partial(
        patch_embed_forward, patch_size=patch_size,
        inner_patches=inner_patches, compute_dtype=None, out_dtype=None))
    out = jax.block_until_ready(fwd_f32(x, conv_w, conv_b))
    ref = _reference_forward(x, conv_w, conv_b, patch_size, inner_patches)
    assert out.shape == expected_shape, out.shape
    assert jnp.allclose(out, ref, atol=1e-4, rtol=1e-4), "f32 mismatch vs reference"

    # --- bf16 operand + bf16 output path (f32 accumulation): compare against
    # a reference computed on the same bf16-rounded operands / output ---
    fwd_bf16 = jax.jit(functools.partial(
        patch_embed_forward, patch_size=patch_size,
        inner_patches=inner_patches, compute_dtype=jnp.bfloat16,
        out_dtype=jnp.bfloat16))
    out_bf = jax.block_until_ready(fwd_bf16(x, conv_w, conv_b))
    assert out_bf.shape == expected_shape, out_bf.shape
    assert out_bf.dtype == jnp.bfloat16, out_bf.dtype
    x_r = x.astype(jnp.bfloat16).astype(jnp.float32)
    w_r = conv_w.astype(jnp.bfloat16).astype(jnp.float32)
    ref_bf = _reference_forward(x_r, w_r, conv_b, patch_size, inner_patches)
    ref_bf = ref_bf.astype(jnp.bfloat16).astype(jnp.float32)
    assert jnp.allclose(out_bf.astype(jnp.float32), ref_bf,
                        atol=1e-2, rtol=2e-2), \
        "bf16 mismatch vs bf16-rounded reference"

    print("KERNEL_OK")
</pallas_src>

<mosaic_0001>
module attributes {stable_mosaic.version = 11 : i64} {
  func.func @_patch_embed_kernel(%arg0: i32, %arg1: memref<64x16xf32, #tpu.memory_space<vmem>>, %arg2: memref<16x128xf32, #tpu.memory_space<vmem>>, %arg3: memref<1x128xf32, #tpu.memory_space<vmem>>, %arg4: memref<64x128xf32, #tpu.memory_space<vmem>>) attributes {dimension_semantics = [#tpu.dimension_semantics<parallel>], iteration_bounds = array<i64: 2>, scalar_prefetch = 0 : i64, scratch_operands = 0 : i64, tpu.core_type = #tpu.core_type<tc>, window_params = [{transform_indices = @transform_0, window_bounds = array<i64: 64, 16>}, {pipeline_mode = #tpu.pipeline_mode<synchronous>, transform_indices = @transform_1, window_bounds = array<i64: 16, 128>}, {pipeline_mode = #tpu.pipeline_mode<synchronous>, transform_indices = @transform_2, window_bounds = array<i64: 1, 128>}, {transform_indices = @transform_3, window_bounds = array<i64: 64, 128>}]} {
    %c0 = arith.constant 0 : index
    %c0_0 = arith.constant 0 : index
    %0 = vector.load %arg1[%c0, %c0_0] : memref<64x16xf32, #tpu.memory_space<vmem>>, vector<64x16xf32>
    %c0_1 = arith.constant 0 : index
    %c0_2 = arith.constant 0 : index
    %1 = vector.load %arg2[%c0_1, %c0_2] : memref<16x128xf32, #tpu.memory_space<vmem>>, vector<16x128xf32>
    %cst = arith.constant dense<0.000000e+00> : vector<64x128xf32>
    %2 = tpu.matmul %0, %1, %cst {dimension_numbers = #tpu.dot_dimension_numbers<[1], [0], [0], [1], [0, 0, 1, 1], [], []>} : vector<64x16xf32>, vector<16x128xf32>, vector<64x128xf32> -> vector<64x128xf32>
    %c0_3 = arith.constant 0 : index
    %c0_4 = arith.constant 0 : index
    %3 = vector.load %arg3[%c0_3, %c0_4] : memref<1x128xf32, #tpu.memory_space<vmem>>, vector<1x128xf32>
    %4 = vector.broadcast %3 : vector<1x128xf32> to vector<64x128xf32>
    %5 = arith.addf %2, %4 : vector<64x128xf32>
    %c0_5 = arith.constant 0 : index
    %c0_6 = arith.constant 0 : index
    %6 = vector.load %arg4[%c0_5, %c0_6] : memref<64x128xf32, #tpu.memory_space<vmem>>, vector<64x128xf32>
    tpu.vector_store %arg4[%c0_5, %c0_6], %5 {strides = array<i32>} : memref<64x128xf32, #tpu.memory_space<vmem>>, vector<64x128xf32>,
    return
  }
  func.func @transform_0(%arg0: i32) -> (i32, i32) {
    %c0_i32 = arith.constant 0 : i32
    %c0_i32_0 = arith.constant 0 : i32
    return %arg0, %c0_i32 : i32, i32
  }
  func.func @transform_1(%arg0: i32) -> (i32, i32) {
    %c0_i32 = arith.constant 0 : i32
    %c0_i32_0 = arith.constant 0 : i32
    %c0_i32_1 = arith.constant 0 : i32
    return %c0_i32, %c0_i32_0 : i32, i32
  }
  func.func @transform_2(%arg0: i32) -> (i32, i32) {
    %c0_i32 = arith.constant 0 : i32
    %c0_i32_0 = arith.constant 0 : i32
    %c0_i32_1 = arith.constant 0 : i32
    return %c0_i32, %c0_i32_0 : i32, i32
  }
  func.func @transform_3(%arg0: i32) -> (i32, i32) {
    %c0_i32 = arith.constant 0 : i32
    %c0_i32_0 = arith.constant 0 : i32
    return %arg0, %c0_i32 : i32, i32
  }
}

</mosaic_0001>

<bundles_post_ra>
// kernel: patch_embed_forward.2
= control target key start
LH: loop header
LB: loop body
LE: loop exit
PB: predicated region body
PF: predicated region fallthrough
CT: control target
= control target key end

     0   :  { %s757_s0 = inlined_call_operand.vmem [shape: f32[128,16], index: 0, kind: input, shape index: {}]   ;;  %s758_s1 = inlined_call_operand.vmem [shape: f32[16,32], index: 1, kind: input, shape index: {}]   ;;  %s759_s2 = inlined_call_operand.<no memory space> [shape: f32[], index: 2, kind: input, shape index: {}]   ;;  %s760_s3 = inlined_call_operand.vmem [shape: f32[1,32], index: 3, kind: input, shape index: {}]   ;;  %s761_s4 = inlined_call_operand.hbm [shape: f32[128,128], index: 4, kind: output, shape index: {}]  }
   0x1   :  { %v628_v0 = vstv %s759_s2 }
   0x2   :  { %11 = vsyncpa [#allocation13], 0 }
   0x3   :  { %13 = vsyncpa [#allocation13 + $0x1], 0  ;;  %s630_s17 = smov 0   ;;  %s632_s18 = smov 0  }
   0x4   :  { %s634_s19 = smov 0   ;;  %s636_s20 = smov 0  }
   0x5 LB: > { %s651_s2 = sadd.s32 4294967295, %s595_s20   ;;  %s437_s21 = sadd.s32 4294967294, %s595_s20   ;;  %s595_s20 = sphi %s636_s20, %s767_s20   ;;  %s591_s19 = sphi %s634_s19, %s766_s19   ;;  %s587_s18 = sphi %s632_s18, %s765_s18   ;;  %s583_s17 = sphi %s630_s17, %s764_s17  }
   0x6   : > { %s655_s22 = sadd.s32 1, %s595_s20   ;;  %s94_s23 = sadd.s32 1, %s591_s19 }
   0x7   : > { %s91_s24 = ssub.s32 %s595_s20, %s655_s22  ;;  %p104_p0 = scmp.ne.s32.totalorder %s591_s19, %s587_s18 }
   0x8   : > { %p92_p1 = scmp.eq.s32.totalorder %s91_s24, 0  ;;  %p105_p2 = scmp.eq.s32.totalorder %s651_s2, 1 }
   0x9   : > { %p110_p3 = scmp.ne.s32.totalorder %s587_s18, %s583_s17  ;;  %p111_p4 = scmp.eq.s32.totalorder %s437_s21, 1 }
   0xa   : > { %s666_s25 = scalar_select %p92_p1, %s591_s19, %s94_s23  }
   0xb   : > { %p668_p5 = por %p105_p2, %p104_p0  ;;  %p672_p6 = por %p111_p4, %p110_p3 }
   0xc   : > { %p440_p7 = scmp.ge.s32.totalorder %s595_s20, 1  ;;  %p144_p8 = scmp.lt.s32.totalorder %s595_s20, 3 }
   0xe   : > { %p145_p9 = pnand %p440_p7, %p144_p8 }
  0x10   : > { %148 = sbr.rel (%p145_p9) target bundleno = 269 (0x10d), region = 32 }
  0x17   : > { %v176_v1 = vlaneseq  ;;  %s442_s28 = sshll.u32 %s651_s2, 3  ;;  %v175_v2 = vld [vmem:[%s758_s1] sm:$0xff]  ;;  %v444_v4 = vld [vmem:[%s758_s1 + $0x8] sm:$0xff]  ;;  %vm223_vm2 = vcmask 130048   ;;  %s165_s13 = sand.u32 1, %s587_s18  }
  0x18   : > { %p169_p10 = scmp.lt.s32.totalorder %s442_s28, 15  ;;  %v193_v5 = vld [vmem:[%s760_s3] sm:$0x1]  ;;  %s441_s14 = sshll.u32 %s165_s13, 6 }
  0x19   : > { %v177_v3 = vand.u32 127, %v176_v1  ;;  %v195_v6 = vshrl.u32 %v176_v1, 7  ;;  %s459_s15 = sshll.u32 %s651_s2, 10  ;;  %s167_s16 = scalar_lea.vmem [#allocation12], %s441_s14 }
  0x1a   : > { %s769_s28 = smov (!%p169_p10, %s442_s28), 15  ;;  %s375_s21 = sshll.u32 %s167_s16, 4  ;;  %s712_s21 = int_to_ptr.vmem [resolvable:$true] %s375_s21 }
  0x1b   : > { %vm179_vm0 = vcmp.lt.s32.totalorder %v177_v3, 32  ;;  %vm197_vm1 = vcmp.lt.s32.totalorder %v195_v6, 1  ;;  %s443_s9 = sshll.u32 %s769_s28, 3  ;;  %s710_s28 = scalar_lea.hbm %s761_s4, %s459_s15 }
  0x1c   : > { %v180_v7 = vsel %vm179_vm0, %v175_v2, %v628_v0  ;;  %v189_v8 = vsel %vm179_vm0, %v444_v4, %v628_v0  ;;  %v198_v9 = vsel %vm197_vm1, %v193_v5, %v628_v0  ;;  %s172_s12 = scalar_lea.vmem %s757_s0, %s443_s9  ;;  %s716_s2 = scalar_lea.sflag [#allocation13], %s165_s13 }
  0x1d   : > { %v203_v10 = vsel %vm179_vm0, %v198_v9, %v628_v0  ;;  %v486_v11 = vpack.c.bf16 %v189_v8, %v180_v7  ;;  %v206_v12 = vld [vmem:[%s172_s12] sm:$0xff]  ;;  %v207_v14 = vld [vmem:[%s172_s12 + $0x8] sm:$0xff]  ;;  %v208_v16 = vld [vmem:[%s172_s12 + $0x10] sm:$0xff]  ;;  %s533_s29 = scalar_lea.vmem %s712_s21, 1024  ;;  %s597_s30 = smov [#allocation12]  }
  0x1e   : > { %205 = vst [vmem:[#allocation15] sm:$0x1] %v203_v10  ;;  %v210_v13 = vld [vmem:[%s172_s12 + $0x20] sm:$0xff]  ;;  %v211_v15 = vld [vmem:[%s172_s12 + $0x28] sm:$0xff]  ;;  %474 = vmatprep.mubr.msk.f32.mxu0 %vm223_vm2, %v206_v12  ;;  %v212_v17 = vld [vmem:[%s172_s12 + $0x30] sm:$0xff]  ;;  %p534_p11 = scmp.ne.s32.totalorder %s712_s21, %s533_s29  ;;  %s537_s5 = sshll.u32 %s597_s30, 4  ;;  %s538_s5 = int_to_ptr.vmem [resolvable:$false] %s537_s5 }
  0x1f   : > { %487 = vmatprep.subr.bf16.mxu0 %v486_v11  ;;  %490 = vmatprep.subr.bf16.mxu1 %v486_v11  ;;  %v209_v18 = vld [vmem:[%s172_s12 + $0x18] sm:$0xff]  ;;  %s539_s6 = scalar_lea.vmem %s538_s5, 2048  ;;  %p540_p0 = scmp.lt.s32.totalorder %s712_s21, %s538_s5 }
  0x20   : > { %489 = vmatpush3.bf16.msra.mxu0 %v486_v11  ;;  %491 = vmatpush3.bf16.msra.mxu1 %v486_v11  ;;  %v213_v19 = vld [vmem:[%s172_s12 + $0x38] sm:$0xff]  ;;  %p535_p12 = pnand %p534_p11, %p668_p5  ;;  %p541_p1 = scmp.lt.s32.totalorder %s539_s6, %s533_s29 }
  0x21   : > { %480 = vmatprep.mubr.msk.f32.mxu1 %vm223_vm2, %v210_v13 }
  0x22   : > { %p536_p13 = pneg %p535_p12  ;;  %p542_p2 = por %p541_p1, %p540_p0 }
  0x23   : > { %475 = vmatmul.mubr.msk.f32.vlgmr.msra.gmra.mrb[0].mxu0 %vm223_vm2, %v207_v14  ;;  %481 = vmatmul.mubr.msk.f32.vlgmr.msra.gmra.mrb[0].mxu1 %vm223_vm2, %v211_v15 }
  0x24   : > { %477 = vmatprep.mubr.msk.f32.mxu0 %vm223_vm2, %v208_v16  ;;  %483 = vmatprep.mubr.msk.f32.mxu1 %vm223_vm2, %v212_v17  ;;  %p543_p3 = pnand %p542_p2, %p536_p13 }
  0x25   : > { %v445_v20 = vld [vmem:[#allocation15] ss:$0 sm:$0xff] }
  0x27   : > { %478 = vmatmul.mubr.msk.f32.gmra.mrb[2].mxu0 %vm223_vm2, %v209_v18  ;;  %484 = vmatmul.mubr.msk.f32.gmra.mrb[2].mxu1 %vm223_vm2, %v213_v19 }
  0xf6   : > { %v476_v21 = vpop.f32.mrb[0].mxu0  ;;  %v482_v22 = vpop.f32.mrb[0].mxu1 }
  0xf7   : > { %v320_v23 = vadd.f32 %v476_v21, %v445_v20  ;;  %v340_v24 = vadd.f32 %v482_v22, %v445_v20  ;;  %v314_v25 = vpop.f32.mrb[1].mxu0  ;;  %v334_v26 = vpop.f32.mrb[1].mxu1 }
  0xf8   : > { %v315_v27 = vadd.f32 %v445_v20, %v314_v25  ;;  %v335_v28 = vadd.f32 %v445_v20, %v334_v26 }
  0xf9   : > { %354 = vst [vmem:[%s167_s16 + $0x8] sm:$0xff] %v320_v23  ;;  %358 = vst [vmem:[%s167_s16 + $0x28] sm:$0xff] %v340_v24 }
  0xfa   : > { %353 = vst [vmem:[%s167_s16] sm:$0xff] %v315_v27  ;;  %357 = vst [vmem:[%s167_s16 + $0x20] sm:$0xff] %v335_v28  ;;  %v479_v29 = vpop.f32.mrb[2].mxu0  ;;  %v485_v30 = vpop.f32.mrb[2].mxu1 }
  0xfb   : > { %v330_v31 = vadd.f32 %v479_v29, %v445_v20  ;;  %v350_v32 = vadd.f32 %v485_v30, %v445_v20  ;;  %v324_v33 = vpop.f32.mrb[3].mxu0  ;;  %v344_v34 = vpop.f32.mrb[3].mxu1 }
  0xfc   : > { %v325_v35 = vadd.f32 %v445_v20, %v324_v33  ;;  %v345_v36 = vadd.f32 %v445_v20, %v344_v34 }
  0xfd   : > { %356 = vst [vmem:[%s167_s16 + $0x18] sm:$0xff] %v330_v31  ;;  %360 = vst [vmem:[%s167_s16 + $0x38] sm:$0xff] %v350_v32 }
  0xfe   : > { %355 = vst [vmem:[%s167_s16 + $0x10] sm:$0xff] %v325_v35  ;;  %359 = vst [vmem:[%s167_s16 + $0x30] sm:$0xff] %v345_v36 }
  0xff   : > { %546 = shalt.err (!%p543_p3)
}
 0x100   : > { %s547_s7 = scalar_lea.hbm %s710_s28, 1024  ;;  %s551_s10 = scalar_lea.hbm %s761_s4, 2048 }
 0x101   : > { %p548_p4 = scmp.ne.s32.totalorder %s710_s28, %s547_s7  ;;  %p552_p9 = scmp.lt.u32.totalorder %s710_s28, %s761_s4 }
 0x102   : > { %p553_p10 = scmp.lt.u32.totalorder %s551_s10, %s547_s7  ;;  %p555_p12 = scmp.lt.u32.totalorder %s547_s7, %s710_s28 }
 0x103   : > { %p549_p7 = pnand %p548_p4, %p668_p5 }
 0x104   : > { %p554_p11 = por %p553_p10, %p552_p9 }
 0x105   : > { %p550_p8 = pneg %p549_p7 }
 0x106   : > { %p556_p13 = por %p555_p12, %p554_p11 }
 0x108   : > { %p557_p0 = pnand %p556_p13, %p550_p8 }
 0x10a   : > { %560 = shalt.err (!%p557_p0)
}
 0x10b   : > { %s598_s13 = smov 128   ;;  %s599_s14 = smov 8  }
 0x10c   : > { %492 = dma.vmem_to_hbm [thread:$0]  (%p668_p5), %s712_s21, 1024, %s710_s28, %s716_s2, %s598_s13, %s598_s13, %s599_s14  }
 0x10d PF: > { %p498_p1 = scmp.ge.s32.totalorder %s595_s20, 2  ;;  %s390_s15 = sand.u32 1, %s583_s17  }
 0x10e   : > { %s391_s16 = scalar_lea.sflag [#allocation13], %s390_s15 }
 0x10f   : > { %p495_p2 = pnand %p498_p1, %p672_p6 }
 0x111   : > { %578 = dma.done.wait (!%p495_p2), %s391_s16, 1024  }
 0x112   : > { %580 = vsyncadd (!%p495_p2), %s391_s16, 4294966272  ;;  %p16_p3 = scmp.ge.s32.totalorder %s655_s22, 4   ;;  %s764_s17 = smov %s587_s18 }
 0x113   : > { %s765_s18 = smov %s591_s19  ;;  %s766_s19 = smov %s666_s25 }
 0x114   : > { %s767_s20 = smov %s655_s22  ;;  %18 = sbr.rel (!%p16_p3) target bundleno = 5 (0x5), region = 69 }
 0x11b   :  { %396 = vsyncpa [#allocation13], 1 }
 0x11c   :  { %398 = vsyncpa [#allocation13 + $0x1], 1 }

</bundles_post_ra>
